<compile_context>
chip_gen: v6e
topology: v6e:2x2x1
jax: 0.10.0
libtpu: 0.0.40
codegen_flags: <defaults>
</compile_context>

<pallas_src>
import functools

import jax
import jax.numpy as jnp
from jax.experimental import pallas as pl
from jax.experimental.pallas import tpu as pltpu

EMBEDDING_DIM = 256


def _round_up(a, m):
    return (a + m - 1) // m * m


def _pick_vocab_tile(v_pad, cands=(2048, 1024, 512, 256, 128)):
    """Largest lane-dense tile (multiple of 128, <= 2048) dividing the padded vocab size."""
    for c in cands:
        if c <= v_pad and v_pad % c == 0:
            return c
    return v_pad  # v_pad < 128 (tiny test vocab): use the full padded dim.


def _batch_tiling(b, max_tile_b):
    """(tile_b, padded_B) with zero padding when b <= max_tile_b, else < 16 rows of padding."""
    if b <= max_tile_b:
        return b, b
    n_tiles = -(-b // max_tile_b)                    # cdiv
    tile_b = _round_up(-(-b // n_tiles), 16)
    return tile_b, n_tiles * tile_b


def _vmem_limit_bytes():
    # ~75% of physical per-core VMEM: ~48 MiB on v7x (64 MiB phys), 96 MiB on v5e/v6e (128 MiB),
    # capped at 100 MiB.  Actual per-step footprint of these kernels is only a few MiB.
    try:
        cap = pltpu.get_tpu_info().vmem_capacity_bytes
    except Exception:
        cap = 64 * 1024 * 1024
    return min(int(cap * 0.75), 100 * 1024 * 1024)


# ---------------------------------------------------------------------------
# Encoder: h = relu(x @ W_enc + b_enc), with the V-sized contraction tiled.
# ---------------------------------------------------------------------------
def _encoder_kernel(x_ref, w_enc_ref, b_enc_ref, h_ref, acc_ref, *, compute_dtype):
    k = pl.program_id(1)

    @pl.when(k == 0)
    def _():
        acc_ref[...] = jnp.zeros_like(acc_ref)

    # x is cast in-kernel (hidden under the matmul); weights already arrive in bf16.
    acc_ref[...] += jnp.dot(x_ref[...].astype(compute_dtype), w_enc_ref[...],
                            preferred_element_type=jnp.float32)

    @pl.when(k == pl.num_programs(1) - 1)
    def _():
        h_ref[...] = jnp.maximum(acc_ref[...] + b_enc_ref[...], 0.0).astype(h_ref.dtype)


# ---------------------------------------------------------------------------
# Decoder: y = h @ W_dec + b_dec, one lane-dense output-column tile per step.
# Both grid axes are data-parallel (v7x megacore splits the column tiles).
# ---------------------------------------------------------------------------
def _decoder_kernel(h_ref, w_dec_ref, b_dec_ref, o_ref):
    y = jnp.dot(h_ref[...], w_dec_ref[...], preferred_element_type=jnp.float32)
    o_ref[...] = (y + b_dec_ref[...]).astype(o_ref.dtype)


def residual_autoencoder_forward(x, w_enc, b_enc, w_dec, b_dec, *,
                                 max_tile_b=256,            # use 128 on v5e
                                 compute_dtype=jnp.bfloat16,
                                 out_dtype=jnp.float32):    # bf16 halves output HBM writeback
    """x: (B, V); w_enc: (V, E); b_enc: (E,); w_dec: (E, V); b_dec: (V,). Returns (B, V).

    Weights are the nn.Linear weights pre-transposed to (in, out) layout.  Store w_enc / w_dec
    persistently in `compute_dtype` (bf16) to avoid a per-call cast round trip over HBM.
    """
    B, V = x.shape
    E = w_enc.shape[1]

    tile_b, B_pad = _batch_tiling(B, max_tile_b)
    V_pad = max(_round_up(V, 128), 128)
    tile_v = _pick_vocab_tile(V_pad)   # decoder output-column tile
    tile_k = _pick_vocab_tile(V_pad)   # encoder contraction tile

    # Pad only when required (no-op -> zero extra HBM traffic for aligned shapes).
    if B_pad != B or V_pad != V:
        x = jnp.pad(x, ((0, B_pad - B), (0, V_pad - V)))
    if V_pad != V:
        w_enc = jnp.pad(w_enc, ((0, V_pad - V), (0, 0)))
        w_dec = jnp.pad(w_dec, ((0, 0), (0, V_pad - V)))
        b_dec = jnp.pad(b_dec, ((0, V_pad - V),))

    # Weights should already be stored in compute_dtype; cast only as a fallback.
    if w_enc.dtype != compute_dtype:
        w_enc = w_enc.astype(compute_dtype)
    if w_dec.dtype != compute_dtype:
        w_dec = w_dec.astype(compute_dtype)
    b_enc2 = b_enc.reshape(1, E).astype(jnp.float32)
    b_dec2 = b_dec.reshape(1, V_pad).astype(jnp.float32)

    n_b = B_pad // tile_b
    vmem_limit = _vmem_limit_bytes()
    w_isz = jnp.dtype(compute_dtype).itemsize
    x_isz = jnp.dtype(x.dtype).itemsize
    h_isz = jnp.dtype(compute_dtype).itemsize
    o_isz = jnp.dtype(out_dtype).itemsize

    # ------------------------------ encoder -------------------------------
    enc_cost = pl.CostEstimate(
        flops=2 * B_pad * V_pad * E,
        transcendentals=0,
        bytes_accessed=(B_pad * V_pad * x_isz          # x (read once)
                        + n_b * V_pad * E * w_isz      # w_enc re-streamed per batch tile
                        + E * 4                        # b_enc
                        + B_pad * E * h_isz),          # h writeback
    )
    h = pl.pallas_call(
        functools.partial(_encoder_kernel, compute_dtype=compute_dtype),
        out_shape=jax.ShapeDtypeStruct((B_pad, E), compute_dtype),
        grid=(n_b, V_pad // tile_k),
        in_specs=[
            pl.BlockSpec((tile_b, tile_k), lambda i, k: (i, k)),   # x
            pl.BlockSpec((tile_k, E), lambda i, k: (k, 0)),        # w_enc
            pl.BlockSpec((1, E), lambda i, k: (0, 0)),             # b_enc
        ],
        out_specs=pl.BlockSpec((tile_b, E), lambda i, k: (i, 0)),
        scratch_shapes=[pltpu.VMEM((tile_b, E), jnp.float32)],     # f32 accumulator
        compiler_params=pltpu.CompilerParams(
            dimension_semantics=("parallel", "arbitrary"),
            vmem_limit_bytes=vmem_limit,
        ),
        cost_estimate=enc_cost,
    )(x, w_enc, b_enc2)

    # ------------------------------ decoder -------------------------------
    dec_cost = pl.CostEstimate(
        flops=2 * B_pad * V_pad * E,
        transcendentals=0,
        bytes_accessed=(B_pad * E * h_isz              # h (fetched once per batch tile)
                        + n_b * E * V_pad * w_isz      # w_dec re-streamed per batch tile
                        + V_pad * 4                    # b_dec
                        + B_pad * V_pad * o_isz),      # output writeback
    )
    out = pl.pallas_call(
        _decoder_kernel,
        out_shape=jax.ShapeDtypeStruct((B_pad, V_pad), out_dtype),
        grid=(n_b, V_pad // tile_v),
        in_specs=[
            pl.BlockSpec((tile_b, E), lambda i, j: (i, 0)),        # h
            pl.BlockSpec((E, tile_v), lambda i, j: (0, j)),        # w_dec
            pl.BlockSpec((1, tile_v), lambda i, j: (0, j)),        # b_dec
        ],
        out_specs=pl.BlockSpec((tile_b, tile_v), lambda i, j: (i, j)),
        compiler_params=pltpu.CompilerParams(
            dimension_semantics=("parallel", "parallel"),          # megacore: split column tiles
            vmem_limit_bytes=vmem_limit,
        ),
        cost_estimate=dec_cost,
    )(h, w_dec, b_dec2)

    if B_pad != B or V_pad != V:
        out = out[:B, :V]
    return out


def _reference_f32(x, w_enc, b_enc, w_dec, b_dec):
    h = jnp.maximum(x @ w_enc + b_enc, 0.0)
    return h @ w_dec + b_dec


def _reference_bf16(x, w_enc, b_enc, w_dec, b_dec):
    # Mirrors the kernel's precision choices (bf16 operands + bf16 h, f32 accumulation).
    h = jnp.maximum(
        jnp.dot(x.astype(jnp.bfloat16), w_enc.astype(jnp.bfloat16),
                preferred_element_type=jnp.float32) + b_enc, 0.0)
    return jnp.dot(h.astype(jnp.bfloat16), w_dec.astype(jnp.bfloat16),
                   preferred_element_type=jnp.float32) + b_dec


if __name__ == "__main__":
    # Synthetic MediSimConfig-like sizes (kept small):
    #   total_vocab_size - special_vocab_size = 512
    VOCAB = 512          # V = config.total_vocab_size - config.special_vocab_size
    BATCH = 8

    key = jax.random.PRNGKey(0)
    kx, k1, k2, k3, k4 = jax.random.split(key, 5)

    x = jax.random.normal(kx, (BATCH, VOCAB), dtype=jnp.float32)
    s_enc = 1.0 / jnp.sqrt(jnp.float32(VOCAB))
    s_dec = 1.0 / jnp.sqrt(jnp.float32(EMBEDDING_DIM))
    # Stored pre-transposed to (in, out) layout for the kernel.
    w_enc_f32 = jax.random.uniform(k1, (VOCAB, EMBEDDING_DIM), jnp.float32, -s_enc, s_enc)
    b_enc = jax.random.uniform(k2, (EMBEDDING_DIM,), jnp.float32, -s_enc, s_enc)
    w_dec_f32 = jax.random.uniform(k3, (EMBEDDING_DIM, VOCAB), jnp.float32, -s_dec, s_dec)
    b_dec = jax.random.uniform(k4, (VOCAB,), jnp.float32, -s_dec, s_dec)

    # Persistent bf16 weight storage (cast once here, not per forward call).
    w_enc = w_enc_f32.astype(jnp.bfloat16)
    w_dec = w_dec_f32.astype(jnp.bfloat16)

    out = residual_autoencoder_forward(x, w_enc, b_enc, w_dec, b_dec)
    out = jax.block_until_ready(out)
    assert out.shape == (BATCH, VOCAB)

    # Tight check against a reference using identical bf16/f32 precision choices.
    ref_bf16 = _reference_bf16(x, w_enc_f32, b_enc, w_dec_f32, b_dec)
    assert jnp.allclose(out, ref_bf16, atol=2e-3, rtol=2e-3)

    # Loose check against the pure-f32 PyTorch-equivalent forward.
    ref_f32 = _reference_f32(x, w_enc_f32, b_enc, w_dec_f32, b_dec)
    assert jnp.allclose(out, ref_f32, atol=5e-2, rtol=5e-2)

    print("KERNEL_OK")
</pallas_src>

<mosaic_0001>
module attributes {stable_mosaic.version = 11 : i64} {
  func.func @_encoder_kernel(%arg0: i32, %arg1: i32, %arg2: memref<8x512xf32, #tpu.memory_space<vmem>>, %arg3: memref<512x256xbf16, #tpu.memory_space<vmem>>, %arg4: memref<1x256xf32, #tpu.memory_space<vmem>>, %arg5: memref<8x256xbf16, #tpu.memory_space<vmem>>, %arg6: memref<8x256xf32, #tpu.memory_space<vmem>>) attributes {dimension_semantics = [#tpu.dimension_semantics<parallel>, #tpu.dimension_semantics<arbitrary>], iteration_bounds = array<i64: 1, 1>, scalar_prefetch = 0 : i64, scratch_operands = 1 : i64, tpu.core_type = #tpu.core_type<tc>, window_params = [{transform_indices = @transform_0, window_bounds = array<i64: 8, 512>}, {transform_indices = @transform_1, window_bounds = array<i64: 512, 256>}, {pipeline_mode = #tpu.pipeline_mode<synchronous>, transform_indices = @transform_2, window_bounds = array<i64: 1, 256>}, {transform_indices = @transform_3, window_bounds = array<i64: 8, 256>}]} {
    %c0_i32 = arith.constant 0 : i32
    %0 = arith.cmpi eq, %arg1, %c0_i32 : i32
    %1 = arith.extui %0 : i1 to i32
    %c0_i32_0 = arith.constant 0 : i32
    %2 = arith.cmpi ne, %1, %c0_i32_0 : i32
    scf.if %2 {
      %cst_10 = arith.constant 0.000000e+00 : f32
      %13 = vector.broadcast %cst_10 : f32 to vector<8x256xf32>
      %c0_11 = arith.constant 0 : index
      %c0_12 = arith.constant 0 : index
      %14 = vector.load %arg6[%c0_11, %c0_12] : memref<8x256xf32, #tpu.memory_space<vmem>>, vector<8x256xf32>
      tpu.vector_store %arg6[%c0_11, %c0_12], %13 {strides = array<i32>} : memref<8x256xf32, #tpu.memory_space<vmem>>, vector<8x256xf32>,
    } else {
    }
    %c0 = arith.constant 0 : index
    %c0_1 = arith.constant 0 : index
    %3 = vector.load %arg6[%c0, %c0_1] : memref<8x256xf32, #tpu.memory_space<vmem>>, vector<8x256xf32>
    %c0_2 = arith.constant 0 : index
    %c0_3 = arith.constant 0 : index
    %4 = vector.load %arg2[%c0_2, %c0_3] : memref<8x512xf32, #tpu.memory_space<vmem>>, vector<8x512xf32>
    %5 = arith.truncf %4 : vector<8x512xf32> to vector<8x512xbf16>
    %c0_4 = arith.constant 0 : index
    %c0_5 = arith.constant 0 : index
    %6 = vector.load %arg3[%c0_4, %c0_5] : memref<512x256xbf16, #tpu.memory_space<vmem>>, vector<512x256xbf16>
    %cst = arith.constant dense<0.000000e+00> : vector<8x256xf32>
    %7 = tpu.matmul %5, %6, %cst {dimension_numbers = #tpu.dot_dimension_numbers<[1], [0], [0], [1], [0, 0, 1, 1], [], []>} : vector<8x512xbf16>, vector<512x256xbf16>, vector<8x256xf32> -> vector<8x256xf32>
    %8 = arith.addf %3, %7 : vector<8x256xf32>
    %c0_6 = arith.constant 0 : index
    %c0_7 = arith.constant 0 : index
    %9 = vector.load %arg6[%c0_6, %c0_7] : memref<8x256xf32, #tpu.memory_space<vmem>>, vector<8x256xf32>
    tpu.vector_store %arg6[%c0_6, %c0_7], %8 {strides = array<i32>} : memref<8x256xf32, #tpu.memory_space<vmem>>, vector<8x256xf32>,
    %c0_i32_8 = arith.constant 0 : i32
    %10 = arith.cmpi eq, %arg1, %c0_i32_8 : i32
    %11 = arith.extui %10 : i1 to i32
    %c0_i32_9 = arith.constant 0 : i32
    %12 = arith.cmpi ne, %11, %c0_i32_9 : i32
    scf.if %12 {
      %c0_10 = arith.constant 0 : index
      %c0_11 = arith.constant 0 : index
      %13 = vector.load %arg6[%c0_10, %c0_11] : memref<8x256xf32, #tpu.memory_space<vmem>>, vector<8x256xf32>
      %c0_12 = arith.constant 0 : index
      %c0_13 = arith.constant 0 : index
      %14 = vector.load %arg4[%c0_12, %c0_13] : memref<1x256xf32, #tpu.memory_space<vmem>>, vector<1x256xf32>
      %15 = vector.broadcast %14 : vector<1x256xf32> to vector<8x256xf32>
      %16 = arith.addf %13, %15 : vector<8x256xf32>
      %cst_14 = arith.constant 0.000000e+00 : f32
      %17 = vector.broadcast %cst_14 : f32 to vector<8x256xf32>
      %18 = arith.maximumf %16, %17 : vector<8x256xf32>
      %19 = arith.truncf %18 : vector<8x256xf32> to vector<8x256xbf16>
      %c0_15 = arith.constant 0 : index
      %c0_16 = arith.constant 0 : index
      %20 = vector.load %arg5[%c0_15, %c0_16] : memref<8x256xbf16, #tpu.memory_space<vmem>>, vector<8x256xbf16>
      tpu.vector_store %arg5[%c0_15, %c0_16], %19 {strides = array<i32>} : memref<8x256xbf16, #tpu.memory_space<vmem>>, vector<8x256xbf16>,
    } else {
    }
    return
  }
  func.func @transform_0(%arg0: i32, %arg1: i32) -> (i32, i32) {
    %c0_i32 = arith.constant 0 : i32
    return %arg0, %arg1 : i32, i32
  }
  func.func @transform_1(%arg0: i32, %arg1: i32) -> (i32, i32) {
    %c0_i32 = arith.constant 0 : i32
    %c0_i32_0 = arith.constant 0 : i32
    return %arg1, %c0_i32 : i32, i32
  }
  func.func @transform_2(%arg0: i32, %arg1: i32) -> (i32, i32) {
    %c0_i32 = arith.constant 0 : i32
    %c0_i32_0 = arith.constant 0 : i32
    %c0_i32_1 = arith.constant 0 : i32
    return %c0_i32, %c0_i32_0 : i32, i32
  }
  func.func @transform_3(%arg0: i32, %arg1: i32) -> (i32, i32) {
    %c0_i32 = arith.constant 0 : i32
    %c0_i32_0 = arith.constant 0 : i32
    return %arg0, %c0_i32 : i32, i32
  }
}

</mosaic_0001>

<bundles_post_ra>
// kernel: tpu_custom_call.1
= control target key start
LH: loop header
LB: loop body
LE: loop exit
PB: predicated region body
PF: predicated region fallthrough
CT: control target
= control target key end

     0   :  { %8 = vsyncpa [#allocation4], 0  ;;  %s843_s0 = inlined_call_operand.hbm [shape: f32[8,512], index: 0, kind: input, shape index: {}]   ;;  %s844_s1 = inlined_call_operand.hbm [shape: bf16[512,256], index: 1, kind: input, shape index: {}]   ;;  %s845_s2 = inlined_call_operand.vmem [shape: f32[1,256], index: 2, kind: input, shape index: {}]   ;;  %s846_s3 = inlined_call_operand.hbm [shape: bf16[8,256], index: 3, kind: output, shape index: {}]  }
   0x1   :  { %9 = vsyncpa [#allocation7], 0 }
   0x2   :  { %10 = vsyncpa [#allocation5], 0  ;;  %s806_s12 = smov [#allocation3]   ;;  %s807_s14 = smov [#allocation6]  }
   0x3   :  { %s17_s13 = sshll.u32 %s806_s12, 4  ;;  %s26_s15 = sshll.u32 %s807_s14, 4  ;;  %s18_s13 = int_to_ptr.vmem [resolvable:$true] %s17_s13  ;;  %s27_s15 = int_to_ptr.vmem [resolvable:$true] %s26_s15 }
   0x4   :  { %s748_s16 = scalar_lea.vmem %s18_s13, 512  ;;  %p753_p1 = scmp.lt.s32.totalorder %s18_s13, %s18_s13 }
   0x5   :  { %p749_p0 = scmp.ne.s32.totalorder %s18_s13, %s748_s16  ;;  %p754_p2 = scmp.lt.s32.totalorder %s748_s16, %s748_s16 }
   0x7   :  { %p755_p3 = por %p754_p2, %p753_p1 }
   0x9   :  { %p756_p4 = pnand %p755_p3, %p749_p0 }
   0xb   :  { %759 = shalt.err (!%p756_p4)
}
   0xc   :  { %20 = dma.hbm_to_vmem [thread:$0]  %s843_s0, 512, %s18_s13, [#allocation4]  }
   0xd   :  { %s768_s19 = scalar_lea.vmem %s27_s15, 8192  ;;  %p773_p6 = scmp.lt.s32.totalorder %s27_s15, %s27_s15 }
   0xe   :  { %p769_p5 = scmp.ne.s32.totalorder %s27_s15, %s768_s19  ;;  %p774_p7 = scmp.lt.s32.totalorder %s768_s19, %s768_s19 }
  0x10   :  { %p775_p8 = por %p774_p7, %p773_p6 }
  0x12   :  { %p776_p9 = pnand %p775_p8, %p769_p5 }
  0x14   :  { %779 = shalt.err (!%p776_p9)
}
  0x15   :  { %s808_s20 = smov 128   ;;  %s809_s21 = smov 8  }
  0x16   :  { %32 = dma.hbm_to_vmem [thread:$0]  %s844_s1, 8192, %s27_s15, [#allocation7], %s808_s20, %s808_s20, %s809_s21  }
  0x17   :  { %800 = dma.done.wait [#allocation4], 512  }
  0x18   :  { %801 = vsyncadd [#allocation4], 4294966784 }
  0x19   :  { %802 = dma.done.wait [#allocation7], 8192  }
  0x1a   :  { %803 = vsyncadd [#allocation7], 4294959104  ;;  %v644_v0 = vld [vmem:[#allocation6 + $0x74] ss:$8 sps:$4 sm:$0xff]   ;;  %v648_v2 = vld [vmem:[#allocation6 + $0x70] ss:$8 sps:$4 sm:$0xff]  }
  0x1b   :  { %v646_v1 = vld [vmem:[#allocation6 + $0x174] ss:$8 sps:$4 sm:$0xff]   ;;  %441 = vmatprep.subr.bf16.mxu0 %v644_v0  ;;  %v649_v3 = vld [vmem:[#allocation6 + $0x170] ss:$8 sps:$4 sm:$0xff]   ;;  %v650_v4 = vld [vmem:[#allocation6 + $0x64] ss:$8 sps:$4 sm:$0xff]  }
  0x1c   :  { %482 = vmatprep.subr.bf16.mxu1 %v646_v1  ;;  %442 = vmatpush1.bf16.msra.mxu0 %v648_v2  ;;  %v652_v5 = vld [vmem:[#allocation6 + $0x164] ss:$8 sps:$4 sm:$0xff]   ;;  %v654_v6 = vld [vmem:[#allocation6 + $0x60] ss:$8 sps:$4 sm:$0xff]   ;;  %v656_v8 = vld [vmem:[#allocation6 + $0x54] ss:$8 sps:$4 sm:$0xff]  }
  0x1d   :  { %483 = vmatpush1.bf16.msra.mxu1 %v649_v3  ;;  %443 = vmatprep.subr.bf16.mxu0 %v650_v4  ;;  %v655_v7 = vld [vmem:[#allocation6 + $0x160] ss:$8 sps:$4 sm:$0xff]   ;;  %v658_v9 = vld [vmem:[#allocation6 + $0x154] ss:$8 sps:$4 sm:$0xff]   ;;  %v660_v10 = vld [vmem:[#allocation6 + $0x50] ss:$8 sps:$4 sm:$0xff]  }
  0x1e   :  { %484 = vmatprep.subr.bf16.mxu1 %v652_v5  ;;  %v661_v11 = vld [vmem:[#allocation6 + $0x150] ss:$8 sps:$4 sm:$0xff]   ;;  %v662_v12 = vld [vmem:[#allocation6 + $0x44] ss:$8 sps:$4 sm:$0xff]   ;;  %v666_v14 = vld [vmem:[#allocation6 + $0x40] ss:$8 sps:$4 sm:$0xff]  }
  0x1f   :  { %v664_v13 = vld [vmem:[#allocation6 + $0x144] ss:$8 sps:$4 sm:$0xff]   ;;  %v667_v15 = vld [vmem:[#allocation6 + $0x140] ss:$8 sps:$4 sm:$0xff]   ;;  %v668_v16 = vld [vmem:[#allocation6 + $0x34] ss:$8 sps:$4 sm:$0xff]  }
  0x20   :  { %444 = vmatpush1.bf16.msra.mxu0 %v654_v6  ;;  %v670_v17 = vld [vmem:[#allocation6 + $0x134] ss:$8 sps:$4 sm:$0xff]   ;;  %v672_v18 = vld [vmem:[#allocation6 + $0x30] ss:$8 sps:$4 sm:$0xff]   ;;  %v674_v20 = vld [vmem:[#allocation6 + $0x24] ss:$8 sps:$4 sm:$0xff]  }
  0x21   :  { %485 = vmatpush1.bf16.msra.mxu1 %v655_v7  ;;  %445 = vmatprep.subr.bf16.mxu0 %v656_v8  ;;  %v673_v19 = vld [vmem:[#allocation6 + $0x130] ss:$8 sps:$4 sm:$0xff]   ;;  %v676_v21 = vld [vmem:[#allocation6 + $0x124] ss:$8 sps:$4 sm:$0xff]   ;;  %v678_v22 = vld [vmem:[#allocation6 + $0x20] ss:$8 sps:$4 sm:$0xff]   ;;  %v534_v8 = vlaneseq }
  0x22   :  { %486 = vmatprep.subr.bf16.mxu1 %v658_v9  ;;  %v679_v23 = vld [vmem:[#allocation6 + $0x120] ss:$8 sps:$4 sm:$0xff]   ;;  %v680_v24 = vld [vmem:[#allocation6 + $0x14] ss:$8 sps:$4 sm:$0xff]   ;;  %v684_v26 = vld [vmem:[#allocation6 + $0x10] ss:$8 sps:$4 sm:$0xff]  }
  0x23   :  { %v682_v25 = vld [vmem:[#allocation6 + $0x114] ss:$8 sps:$4 sm:$0xff]   ;;  %v685_v27 = vld [vmem:[#allocation6 + $0x110] ss:$8 sps:$4 sm:$0xff]   ;;  %v686_v28 = vld [vmem:[#allocation6 + $0x4] ss:$8 sps:$4 sm:$0xff]  }
  0x24   :  { %446 = vmatpush1.bf16.msra.mxu0 %v660_v10  ;;  %v688_v29 = vld [vmem:[#allocation6 + $0x104] ss:$8 sps:$4 sm:$0xff]   ;;  %v690_v30 = vld [vmem:[#allocation6] ss:$8 sps:$4 sm:$0xff]   ;;  %v692_v32 = vld [vmem:[#allocation6 + $0xf4] ss:$8 sps:$4 sm:$0xff]  }
  0x25   :  { %487 = vmatpush1.bf16.msra.mxu1 %v661_v11  ;;  %447 = vmatprep.subr.bf16.mxu0 %v662_v12  ;;  %v691_v31 = vld [vmem:[#allocation6 + $0x100] ss:$8 sps:$4 sm:$0xff]   ;;  %v694_v33 = vld [vmem:[#allocation6 + $0x1f4] ss:$8 sps:$4 sm:$0xff]   ;;  %v696_v34 = vld [vmem:[#allocation6 + $0xf0] ss:$8 sps:$4 sm:$0xff]  }
  0x26   :  { %488 = vmatprep.subr.bf16.mxu1 %v664_v13  ;;  %v697_v35 = vld [vmem:[#allocation6 + $0x1f0] ss:$8 sps:$4 sm:$0xff]   ;;  %v698_v36 = vld [vmem:[#allocation6 + $0xe4] ss:$8 sps:$4 sm:$0xff]   ;;  %v702_v38 = vld [vmem:[#allocation6 + $0xe0] ss:$8 sps:$4 sm:$0xff]  }
  0x27   :  { %v700_v37 = vld [vmem:[#allocation6 + $0x1e4] ss:$8 sps:$4 sm:$0xff]   ;;  %v703_v39 = vld [vmem:[#allocation6 + $0x1e0] ss:$8 sps:$4 sm:$0xff]   ;;  %v704_v40 = vld [vmem:[#allocation6 + $0xd4] ss:$8 sps:$4 sm:$0xff]  }
  0x28   :  { %448 = vmatpush1.bf16.msra.mxu0 %v666_v14  ;;  %v706_v41 = vld [vmem:[#allocation6 + $0x1d4] ss:$8 sps:$4 sm:$0xff]   ;;  %v708_v42 = vld [vmem:[#allocation6 + $0xd0] ss:$8 sps:$4 sm:$0xff]   ;;  %v710_v44 = vld [vmem:[#allocation6 + $0xc4] ss:$8 sps:$4 sm:$0xff]  }
  0x29   :  { %489 = vmatpush1.bf16.msra.mxu1 %v667_v15  ;;  %449 = vmatprep.subr.bf16.mxu0 %v668_v16  ;;  %v709_v43 = vld [vmem:[#allocation6 + $0x1d0] ss:$8 sps:$4 sm:$0xff]   ;;  %v712_v45 = vld [vmem:[#allocation6 + $0x1c4] ss:$8 sps:$4 sm:$0xff]   ;;  %v714_v49 = vld [vmem:[#allocation6 + $0xc0] ss:$8 sps:$4 sm:$0xff]  }
  0x2a   :  { %490 = vmatprep.subr.bf16.mxu1 %v670_v17  ;;  %v50_v46 = vld [vmem:[#allocation3 + $0x8] sm:$0xff]  ;;  %v52_v48 = vld [vmem:[#allocation3 + $0x18] sm:$0xff]  ;;  %v49_v4 = vld [vmem:[#allocation3] sm:$0xff]  ;;  %v535_v9 = vshrl.u32 %v534_v8, 7  ;;  %s810_s24 = smov [#allocation8]  }
  0x2b   :  { %v54_v47 = vpack.c.bf16 %v50_v46, %v50_v46  ;;  %v715_v50 = vld [vmem:[#allocation6 + $0x1c0] ss:$8 sps:$4 sm:$0xff]   ;;  %v56_v51 = vpack.c.bf16 %v52_v48, %v52_v48  ;;  %v716_v52 = vld [vmem:[#allocation6 + $0xb4] ss:$8 sps:$4 sm:$0xff]   ;;  %v720_v54 = vld [vmem:[#allocation6 + $0xb0] ss:$8 sps:$4 sm:$0xff]   ;;  %v53_v6 = vpack.c.bf16 %v49_v4, %v49_v4 }
  0x2c   :  { %450 = vmatpush1.bf16.msra.mxu0 %v672_v18  ;;  %v718_v53 = vld [vmem:[#allocation6 + $0x1b4] ss:$8 sps:$4 sm:$0xff]   ;;  %v721_v55 = vld [vmem:[#allocation6 + $0x1b0] ss:$8 sps:$4 sm:$0xff]   ;;  %v722_v56 = vld [vmem:[#allocation6 + $0xa4] ss:$8 sps:$4 sm:$0xff]  }
  0x2d   :  { %491 = vmatpush1.bf16.msra.mxu1 %v673_v19  ;;  %451 = vmatprep.subr.bf16.mxu0 %v674_v20  ;;  %v724_v57 = vld [vmem:[#allocation6 + $0x1a4] ss:$8 sps:$4 sm:$0xff]   ;;  %v726_v58 = vld [vmem:[#allocation6 + $0xa0] ss:$8 sps:$4 sm:$0xff]   ;;  %v728_v60 = vld [vmem:[#allocation6 + $0x94] ss:$8 sps:$4 sm:$0xff]  }
  0x2e   :  { %492 = vmatprep.subr.bf16.mxu1 %v676_v21  ;;  %473 = vmatprep.mubr.bf16.mxu0 %v54_v47  ;;  %v727_v59 = vld [vmem:[#allocation6 + $0x1a0] ss:$8 sps:$4 sm:$0xff]   ;;  %v730_v61 = vld [vmem:[#allocation6 + $0x194] ss:$8 sps:$4 sm:$0xff]   ;;  %v732_v62 = vld [vmem:[#allocation6 + $0x90] ss:$8 sps:$4 sm:$0xff]  }
  0x2f   :  { %514 = vmatprep.mubr.bf16.mxu1 %v56_v51  ;;  %v733_v63 = vld [vmem:[#allocation6 + $0x190] ss:$8 sps:$4 sm:$0xff]   ;;  %v734_v0 = vld [vmem:[#allocation6 + $0x84] ss:$8 sps:$4 sm:$0xff]   ;;  %v738_v2 = vld [vmem:[#allocation6 + $0x80] ss:$8 sps:$4 sm:$0xff]  }
  0x30   :  { %452 = vmatpush1.bf16.msra.mxu0 %v678_v22  ;;  %v736_v1 = vld [vmem:[#allocation6 + $0x184] ss:$8 sps:$4 sm:$0xff]   ;;  %v739_v3 = vld [vmem:[#allocation6 + $0x180] ss:$8 sps:$4 sm:$0xff]   ;;  %v51_v5 = vld [vmem:[#allocation3 + $0x10] sm:$0xff]  ;;  %v536_v10 = vsub.s32 0, %v535_v9 }
  0x31   :  { %493 = vmatpush1.bf16.msra.mxu1 %v679_v23  ;;  %453 = vmatprep.subr.bf16.mxu0 %v680_v24  ;;  %v55_v7 = vpack.c.bf16 %v51_v5, %v51_v5  ;;  %v532_v11 = vld [vmem:[%s845_s2] sm:$0x3]  ;;  %v540_v12 = vsub.s32 1, %v535_v9  ;;  %s563_s25 = sshll.u32 %s810_s24, 4  ;;  %s564_s25 = int_to_ptr.vmem [resolvable:$true] %s563_s25 }
  0x32   :  { %494 = vmatprep.subr.bf16.mxu1 %v682_v25  ;;  %v537_v13 = vrot.slane %v532_v11, %v536_v10  ;;  %s780_s2 = scalar_lea.vmem %s564_s25, 128  ;;  %p785_p11 = scmp.lt.s32.totalorder %s564_s25, %s564_s25 }
  0x33   :  { %v541_v17 = vrot.slane %v532_v11, %v540_v12  ;;  %p781_p10 = scmp.ne.s32.totalorder %s564_s25, %s780_s2  ;;  %p786_p12 = scmp.lt.s32.totalorder %s780_s2, %s780_s2 }
  0x34   :  { %454 = vmatpush1.bf16.msra.mxu0 %v684_v26 }
  0x35   :  { %495 = vmatpush1.bf16.msra.mxu1 %v685_v27  ;;  %455 = vmatprep.subr.bf16.mxu0 %v686_v28  ;;  %p787_p13 = por %p786_p12, %p785_p11 }
  0x36   :  { %496 = vmatprep.subr.bf16.mxu1 %v688_v29 }
  0x37   :  { %p788_p0 = pnand %p787_p13, %p781_p10 }
  0x38   :  { %456 = vmatpush1.bf16.msra.mxu0 %v690_v30 }
  0x39   :  { %497 = vmatpush1.bf16.msra.mxu1 %v691_v31  ;;  %457 = vmatprep.subr.bf16.mxu0 %v692_v32 }
  0x3a   :  { %498 = vmatprep.subr.bf16.mxu1 %v694_v33 }
  0x3c   :  { %458 = vmatpush2.bf16.msra.mxu0 %v696_v34 }
  0x3d   :  { %499 = vmatpush2.bf16.msra.mxu1 %v697_v35  ;;  %459 = vmatprep.subr.bf16.mxu0 %v698_v36 }
  0x3e   :  { %500 = vmatprep.subr.bf16.mxu1 %v700_v37 }
  0x40   :  { %460 = vmatpush2.bf16.msra.mxu0 %v702_v38 }
  0x41   :  { %501 = vmatpush2.bf16.msra.mxu1 %v703_v39  ;;  %461 = vmatprep.subr.bf16.mxu0 %v704_v40 }
  0x42   :  { %502 = vmatprep.subr.bf16.mxu1 %v706_v41 }
  0x44   :  { %462 = vmatpush2.bf16.msra.mxu0 %v708_v42 }
  0x45   :  { %503 = vmatpush2.bf16.msra.mxu1 %v709_v43  ;;  %463 = vmatprep.subr.bf16.mxu0 %v710_v44 }
  0x46   :  { %504 = vmatprep.subr.bf16.mxu1 %v712_v45 }
  0x48   :  { %464 = vmatpush2.bf16.msra.mxu0 %v714_v49 }
  0x49   :  { %505 = vmatpush2.bf16.msra.mxu1 %v715_v50  ;;  %465 = vmatprep.subr.bf16.mxu0 %v716_v52 }
  0x4a   :  { %506 = vmatprep.subr.bf16.mxu1 %v718_v53 }
  0x4c   :  { %466 = vmatpush2.bf16.msra.mxu0 %v720_v54 }
  0x4d   :  { %507 = vmatpush2.bf16.msra.mxu1 %v721_v55  ;;  %467 = vmatprep.subr.bf16.mxu0 %v722_v56 }
  0x4e   :  { %508 = vmatprep.subr.bf16.mxu1 %v724_v57 }
  0x50   :  { %468 = vmatpush2.bf16.msra.mxu0 %v726_v58 }
  0x51   :  { %509 = vmatpush2.bf16.msra.mxu1 %v727_v59  ;;  %469 = vmatprep.subr.bf16.mxu0 %v728_v60 }
  0x52   :  { %510 = vmatprep.subr.bf16.mxu1 %v730_v61 }
  0x54   :  { %470 = vmatpush2.bf16.msra.mxu0 %v732_v62 }
  0x55   :  { %511 = vmatpush2.bf16.msra.mxu1 %v733_v63  ;;  %471 = vmatprep.subr.bf16.mxu0 %v734_v0 }
  0x56   :  { %512 = vmatprep.subr.bf16.mxu1 %v736_v1 }
  0x58   :  { %472 = vmatpush2.bf16.msra.mxu0 %v738_v2 }
  0x59   :  { %513 = vmatpush2.bf16.msra.mxu1 %v739_v3 }
  0x5b   :  { %474 = vmatmul.mubr.bf16.vlgmr.msra.gmra.mxu0 %v53_v6 }
  0x5c   :  { %515 = vmatmul.mubr.bf16.vlgmr.msra.gmra.mxu1 %v55_v7 }
 0x11b   :  { %v475_v14 = vpop.f32.mrf.mxu0 }
 0x11c   :  { %v516_v15 = vpop.f32.mrf.mxu1 }
 0x11d   :  { %v517_v16 = vadd.f32 %v516_v15, %v475_v14  ;;  %v477_v18 = vpop.f32.mrf.mxu0 }
 0x11e   :  { %v518_v19 = vpop.f32.mrf.mxu1 }
 0x11f   :  { %v544_v20 = vadd.f32 %v537_v13, %v517_v16  ;;  %v519_v21 = vadd.f32 %v518_v19, %v477_v18  ;;  %v479_v22 = vpop.f32.mrf.mxu0 }
 0x120   :  { %v520_v23 = vpop.f32.mrf.mxu1 }
 0x121   :  { %v545_v24 = vadd.f32 %v541_v17, %v519_v21  ;;  %v480_v25 = vpop.f32.mrf.mxu0  ;;  %v546_v27 = vmax.f32 %v544_v20, 0.0 }
 0x122   :  { %v521_v26 = vpop.f32.mrf.mxu1 }
 0x123   :  { %v547_v28 = vmax.f32 %v545_v24, 0.0 }
 0x125   :  { %v638_v29 = vpack.c.bf16 %v547_v28, %v546_v27 }
 0x127   :  { %556 = vst [vmem:[#allocation8] sm:$0xff] %v638_v29 }
 0x128   :  { %791 = shalt.err (!%p788_p0)
}
 0x129   :  { %566 = dma.vmem_to_hbm [thread:$0]  %s564_s25, 128, %s846_s3, [#allocation5]  }
 0x12a   :  { %804 = dma.done.wait [#allocation5], 128  }
 0x12b   :  { %805 = vsyncadd [#allocation5], 4294967168 }
 0x12c   :  { %570 = vsyncpa [#allocation4], 1 }
 0x12d   :  { %571 = vsyncpa [#allocation7], 1 }
 0x12e   :  { %572 = vsyncpa [#allocation5], 1 }

</bundles_post_ra>
